<compile_context>
chip_gen: v6e
topology: v6e:2x2x1
jax: 0.10.0
libtpu: 0.0.40
codegen_flags: <defaults>
</compile_context>

<pallas_src>
import jax
import jax.numpy as jnp
from jax.experimental import pallas as pl
from jax.experimental.pallas import tpu as pltpu


def _fusion_kernel(x_ref, w_ref, o_ref):
    # x_ref: (tm, K); w_ref: (K, NPAD) fused, pre-transposed; one MXU pass.
    o_ref[...] = jnp.dot(
        x_ref[...], w_ref[...], preferred_element_type=jnp.float32
    ).astype(o_ref.dtype)


def _round_up(v, m):
    return -(-v // m) * m


def _choose_tm(M, K, itemsize, min_mult, x_budget_bytes=12 << 20):
    """Largest row tile whose double-buffered x tile fits the VMEM budget."""
    tm = x_budget_bytes // (2 * K * itemsize)
    tm = max((tm // min_mult) * min_mult, min_mult)
    tm = min(tm, 2048)                       # diminishing returns past ~2K rows
    tm = min(tm, _round_up(M, min_mult))     # don't exceed (rounded-up) M
    return int(tm)


def fusion_forward(x, w_coarse, w_fine, *, tm=None):
    """Fusion forward: (x @ w_coarse.T, x @ w_fine.T).

    x:        [..., K]
    w_coarse: [n_c, K]   (PyTorch [out_features, in_features] layout)
    w_fine:   [n_f, K]
    Compute runs in x.dtype with f32 MXU accumulation; outputs keep x.dtype.
    """
    orig_shape = x.shape
    K = orig_shape[-1]
    x2 = x.reshape(-1, K)                    # no pad / no cast: x streams as-is
    M = x2.shape[0]
    n_c = w_coarse.shape[0]
    n_f = w_fine.shape[0]
    n_out = n_c + n_f
    n_pad = _round_up(n_out, 8)              # 7 -> 8: one sublane-wide output slab

    dt = jnp.dtype(x.dtype)
    itemsize = dt.itemsize
    min_mult = 16 if itemsize < 4 else 8     # f32 min sublane 8, bf16 min 16

    if tm is None:
        tm = _choose_tm(M, K, itemsize, min_mult)
    assert tm % min_mult == 0

    # Fuse + pre-transpose the constant weights ONCE in the wrapper: [K, n_pad].
    w_fused = jnp.concatenate([w_coarse, w_fine], axis=0)          # [n_out, K]
    w_fused = jnp.pad(w_fused, ((0, n_pad - n_out), (0, 0)))       # [n_pad, K]
    w_fused = w_fused.T.astype(dt)                                 # [K, n_pad]

    grid = (pl.cdiv(M, tm),)                 # ragged tail handled by masking

    # Scoped-VMEM limit: double-buffered x + out tiles plus the tiny weight,
    # with headroom; clamped so it is valid from v5e through v7x (64 MiB/TC).
    x_tile_b = tm * K * itemsize
    o_tile_b = tm * n_pad * itemsize
    w_b = K * n_pad * itemsize
    vmem_need = 2 * (x_tile_b + o_tile_b) + 2 * w_b + (2 << 20)
    vmem_limit = int(min(max(vmem_need, 16 << 20), 48 << 20))

    out = pl.pallas_call(
        _fusion_kernel,
        out_shape=jax.ShapeDtypeStruct((M, n_pad), dt),
        grid_spec=pltpu.PrefetchScalarGridSpec(
            num_scalar_prefetch=0,
            grid=grid,
            in_specs=[
                pl.BlockSpec((tm, K), lambda i: (i, 0)),       # x row tile
                pl.BlockSpec((K, n_pad), lambda i: (0, 0)),    # fused weight, resident
            ],
            out_specs=pl.BlockSpec((tm, n_pad), lambda i: (i, 0)),
        ),
        compiler_params=pltpu.CompilerParams(
            dimension_semantics=("parallel",),                 # megacore on v7x
            vmem_limit_bytes=vmem_limit,
        ),
    )(x2, w_fused)

    c = out[:, :n_c].reshape(*orig_shape[:-1], n_c)
    f = out[:, n_c:n_out].reshape(*orig_shape[:-1], n_f)
    return c, f


if __name__ == "__main__":
    # Small shapes consistent with the module: 16 rows, in_channels=256.
    K = 256
    key = jax.random.PRNGKey(0)
    kx, kc, kf, kx2 = jax.random.split(key, 4)

    # Deterministic synthetic parameters (PyTorch layout: [out_features, in_features]).
    w_coarse = jax.random.normal(kc, (2, K), dtype=jnp.float32) * 0.02
    w_fine = jax.random.normal(kf, (5, K), dtype=jnp.float32) * 0.02

    # --- f32 path: exact module semantics ---
    M = 16
    x = jax.random.normal(kx, (M, K), dtype=jnp.float32)
    c, f = jax.block_until_ready(fusion_forward(x, w_coarse, w_fine))
    c_ref = x @ w_coarse.T
    f_ref = x @ w_fine.T
    assert c.shape == (M, 2) and f.shape == (M, 5)
    assert jnp.allclose(c, c_ref, atol=1e-3, rtol=1e-3)
    assert jnp.allclose(f, f_ref, atol=1e-3, rtol=1e-3)

    # --- bf16 path on a ragged row count (exercises masked boundary tile) ---
    M2 = 13
    x_bf = jax.random.normal(kx2, (M2, K), dtype=jnp.float32).astype(jnp.bfloat16)
    wc_bf = w_coarse.astype(jnp.bfloat16)
    wf_bf = w_fine.astype(jnp.bfloat16)
    c2, f2 = jax.block_until_ready(fusion_forward(x_bf, wc_bf, wf_bf))
    x_bf_f32 = x_bf.astype(jnp.float32)
    c2_ref = x_bf_f32 @ wc_bf.astype(jnp.float32).T
    f2_ref = x_bf_f32 @ wf_bf.astype(jnp.float32).T
    assert c2.shape == (M2, 2) and f2.shape == (M2, 5)
    assert jnp.allclose(c2.astype(jnp.float32), c2_ref, atol=2e-2, rtol=2e-2)
    assert jnp.allclose(f2.astype(jnp.float32), f2_ref, atol=2e-2, rtol=2e-2)

    print("KERNEL_OK")
</pallas_src>

<mosaic_0001>
module attributes {stable_mosaic.version = 11 : i64} {
  func.func @_fusion_kernel(%arg0: i32, %arg1: memref<16x256xf32, #tpu.memory_space<vmem>>, %arg2: memref<256x8xf32, #tpu.memory_space<vmem>>, %arg3: memref<16x8xf32, #tpu.memory_space<vmem>>) attributes {dimension_semantics = [#tpu.dimension_semantics<parallel>], iteration_bounds = array<i64: 1>, scalar_prefetch = 0 : i64, scratch_operands = 0 : i64, tpu.core_type = #tpu.core_type<tc>, window_params = [{transform_indices = @transform_0, window_bounds = array<i64: 16, 256>}, {pipeline_mode = #tpu.pipeline_mode<synchronous>, transform_indices = @transform_1, window_bounds = array<i64: 256, 8>}, {transform_indices = @transform_2, window_bounds = array<i64: 16, 8>}]} {
    %c0 = arith.constant 0 : index
    %c0_0 = arith.constant 0 : index
    %0 = vector.load %arg1[%c0, %c0_0] : memref<16x256xf32, #tpu.memory_space<vmem>>, vector<16x256xf32>
    %c0_1 = arith.constant 0 : index
    %c0_2 = arith.constant 0 : index
    %1 = vector.load %arg2[%c0_1, %c0_2] : memref<256x8xf32, #tpu.memory_space<vmem>>, vector<256x8xf32>
    %cst = arith.constant dense<0.000000e+00> : vector<16x8xf32>
    %2 = tpu.matmul %0, %1, %cst {dimension_numbers = #tpu.dot_dimension_numbers<[1], [0], [0], [1], [0, 0, 1, 1], [], []>} : vector<16x256xf32>, vector<256x8xf32>, vector<16x8xf32> -> vector<16x8xf32>
    %c0_3 = arith.constant 0 : index
    %c0_4 = arith.constant 0 : index
    %3 = vector.load %arg3[%c0_3, %c0_4] : memref<16x8xf32, #tpu.memory_space<vmem>>, vector<16x8xf32>
    tpu.vector_store %arg3[%c0_3, %c0_4], %2 {strides = array<i32>} : memref<16x8xf32, #tpu.memory_space<vmem>>, vector<16x8xf32>,
    return
  }
  func.func @transform_0(%arg0: i32) -> (i32, i32) {
    %c0_i32 = arith.constant 0 : i32
    %c0_i32_0 = arith.constant 0 : i32
    return %arg0, %c0_i32 : i32, i32
  }
  func.func @transform_1(%arg0: i32) -> (i32, i32) {
    %c0_i32 = arith.constant 0 : i32
    %c0_i32_0 = arith.constant 0 : i32
    %c0_i32_1 = arith.constant 0 : i32
    return %c0_i32, %c0_i32_0 : i32, i32
  }
  func.func @transform_2(%arg0: i32) -> (i32, i32) {
    %c0_i32 = arith.constant 0 : i32
    %c0_i32_0 = arith.constant 0 : i32
    return %arg0, %c0_i32 : i32, i32
  }
}

</mosaic_0001>

<bundles_post_ra>
// kernel: tpu_custom_call.1
= control target key start
LH: loop header
LB: loop body
LE: loop exit
PB: predicated region body
PF: predicated region fallthrough
CT: control target
= control target key end

     0   :  { %vm122_vm0 = vcmask 64512   ;;  %s328_s1 = inlined_call_operand.vmem [shape: f32[256,8], index: 1, kind: input, shape index: {}]   ;;  %s329_s0 = inlined_call_operand.vmem [shape: f32[16,256], index: 0, kind: input, shape index: {}]   ;;  %s330_s2 = inlined_call_operand.vmem [shape: f32[16,8], index: 2, kind: output, shape index: {}]  }
   0x1   :  { %v46_v0 = vld [vmem:[%s328_s1 + $0xf8] sm:$0xff]  ;;  %v45_v2 = vld [vmem:[%s328_s1 + $0xf0] sm:$0xff]  ;;  %v44_v4 = vld [vmem:[%s328_s1 + $0xe8] sm:$0xff] }
   0x2   :  { %v30_v1 = vld [vmem:[%s328_s1 + $0x78] sm:$0xff]  ;;  %129 = vmatprep.subr.mxu0 %v46_v0  ;;  %167 = vmatprep.subr.mxu1 %v46_v0  ;;  %v29_v3 = vld [vmem:[%s328_s1 + $0x70] sm:$0xff]  ;;  %v28_v5 = vld [vmem:[%s328_s1 + $0x68] sm:$0xff] }
   0x3   :  { %130 = vmatpush3.msra.mxu0 %v30_v1  ;;  %183 = vmatpush3.msra.mxu1 %v30_v1  ;;  %v43_v6 = vld [vmem:[%s328_s1 + $0xe0] sm:$0xff]  ;;  %v42_v8 = vld [vmem:[%s328_s1 + $0xd8] sm:$0xff]  ;;  %v41_v10 = vld [vmem:[%s328_s1 + $0xd0] sm:$0xff] }
   0x4   :  { %131 = vmatprep.subr.mxu0 %v45_v2  ;;  %168 = vmatprep.subr.mxu1 %v45_v2  ;;  %v27_v7 = vld [vmem:[%s328_s1 + $0x60] sm:$0xff]  ;;  %v26_v9 = vld [vmem:[%s328_s1 + $0x58] sm:$0xff]  ;;  %v25_v11 = vld [vmem:[%s328_s1 + $0x50] sm:$0xff] }
   0x5   :  { %132 = vmatpush3.msra.mxu0 %v29_v3  ;;  %184 = vmatpush3.msra.mxu1 %v29_v3  ;;  %v40_v12 = vld [vmem:[%s328_s1 + $0xc8] sm:$0xff]  ;;  %v39_v14 = vld [vmem:[%s328_s1 + $0xc0] sm:$0xff]  ;;  %v38_v16 = vld [vmem:[%s328_s1 + $0xb8] sm:$0xff] }
   0x6   :  { %133 = vmatprep.subr.mxu0 %v44_v4  ;;  %169 = vmatprep.subr.mxu1 %v44_v4  ;;  %v24_v13 = vld [vmem:[%s328_s1 + $0x48] sm:$0xff]  ;;  %v23_v15 = vld [vmem:[%s328_s1 + $0x40] sm:$0xff]  ;;  %v22_v17 = vld [vmem:[%s328_s1 + $0x38] sm:$0xff] }
   0x7   :  { %134 = vmatpush3.msra.mxu0 %v28_v5  ;;  %185 = vmatpush3.msra.mxu1 %v28_v5  ;;  %v37_v18 = vld [vmem:[%s328_s1 + $0xb0] sm:$0xff]  ;;  %v36_v20 = vld [vmem:[%s328_s1 + $0xa8] sm:$0xff]  ;;  %v35_v22 = vld [vmem:[%s328_s1 + $0xa0] sm:$0xff] }
   0x8   :  { %135 = vmatprep.subr.mxu0 %v43_v6  ;;  %170 = vmatprep.subr.mxu1 %v43_v6  ;;  %v21_v19 = vld [vmem:[%s328_s1 + $0x30] sm:$0xff]  ;;  %v20_v21 = vld [vmem:[%s328_s1 + $0x28] sm:$0xff]  ;;  %v19_v23 = vld [vmem:[%s328_s1 + $0x20] sm:$0xff] }
   0x9   :  { %136 = vmatpush3.msra.mxu0 %v27_v7  ;;  %186 = vmatpush3.msra.mxu1 %v27_v7  ;;  %v34_v24 = vld [vmem:[%s328_s1 + $0x98] sm:$0xff]  ;;  %v33_v26 = vld [vmem:[%s328_s1 + $0x90] sm:$0xff]  ;;  %v32_v28 = vld [vmem:[%s328_s1 + $0x88] sm:$0xff] }
   0xa   :  { %137 = vmatprep.subr.mxu0 %v42_v8  ;;  %171 = vmatprep.subr.mxu1 %v42_v8  ;;  %v18_v25 = vld [vmem:[%s328_s1 + $0x18] sm:$0xff]  ;;  %v17_v27 = vld [vmem:[%s328_s1 + $0x10] sm:$0xff]  ;;  %v16_v29 = vld [vmem:[%s328_s1 + $0x8] sm:$0xff] }
   0xb   :  { %138 = vmatpush3.msra.mxu0 %v26_v9  ;;  %187 = vmatpush3.msra.mxu1 %v26_v9  ;;  %v31_v30 = vld [vmem:[%s328_s1 + $0x80] sm:$0xff]  ;;  %v12_v32 = vld [vmem:[%s329_s0 + $0x8] sm:$0xff]  ;;  %v14_v33 = vld [vmem:[%s329_s0 + $0x18] sm:$0xff] }
   0xc   :  { %139 = vmatprep.subr.mxu0 %v41_v10  ;;  %172 = vmatprep.subr.mxu1 %v41_v10  ;;  %v15_v31 = vld [vmem:[%s328_s1] sm:$0xff]  ;;  %v13_v35 = vld [vmem:[%s329_s0 + $0x10] sm:$0xff] }
   0xd   :  { %140 = vmatpush3.msra.mxu0 %v25_v11  ;;  %188 = vmatpush3.msra.mxu1 %v25_v11  ;;  %v11_v34 = vld [vmem:[%s329_s0] sm:$0xff] }
   0xe   :  { %141 = vmatprep.subr.mxu0 %v40_v12  ;;  %173 = vmatprep.subr.mxu1 %v40_v12 }
   0xf   :  { %142 = vmatpush3.msra.mxu0 %v24_v13  ;;  %189 = vmatpush3.msra.mxu1 %v24_v13 }
  0x10   :  { %143 = vmatprep.subr.mxu0 %v39_v14  ;;  %174 = vmatprep.subr.mxu1 %v39_v14 }
  0x11   :  { %144 = vmatpush3.msra.mxu0 %v23_v15  ;;  %190 = vmatpush3.msra.mxu1 %v23_v15 }
  0x12   :  { %145 = vmatprep.subr.mxu0 %v38_v16  ;;  %175 = vmatprep.subr.mxu1 %v38_v16 }
  0x13   :  { %146 = vmatpush3.msra.mxu0 %v22_v17  ;;  %191 = vmatpush3.msra.mxu1 %v22_v17 }
  0x14   :  { %147 = vmatprep.subr.mxu0 %v37_v18  ;;  %176 = vmatprep.subr.mxu1 %v37_v18 }
  0x15   :  { %148 = vmatpush3.msra.mxu0 %v21_v19  ;;  %192 = vmatpush3.msra.mxu1 %v21_v19 }
  0x16   :  { %149 = vmatprep.subr.mxu0 %v36_v20  ;;  %177 = vmatprep.subr.mxu1 %v36_v20 }
  0x17   :  { %150 = vmatpush3.msra.mxu0 %v20_v21  ;;  %193 = vmatpush3.msra.mxu1 %v20_v21 }
  0x18   :  { %151 = vmatprep.subr.mxu0 %v35_v22  ;;  %178 = vmatprep.subr.mxu1 %v35_v22 }
  0x19   :  { %152 = vmatpush3.msra.mxu0 %v19_v23  ;;  %194 = vmatpush3.msra.mxu1 %v19_v23 }
  0x1a   :  { %153 = vmatprep.subr.mxu0 %v34_v24  ;;  %179 = vmatprep.subr.mxu1 %v34_v24 }
  0x1b   :  { %154 = vmatpush3.msra.mxu0 %v18_v25  ;;  %195 = vmatpush3.msra.mxu1 %v18_v25 }
  0x1c   :  { %155 = vmatprep.subr.mxu0 %v33_v26  ;;  %180 = vmatprep.subr.mxu1 %v33_v26 }
  0x1d   :  { %156 = vmatpush3.msra.mxu0 %v17_v27  ;;  %196 = vmatpush3.msra.mxu1 %v17_v27 }
  0x1e   :  { %157 = vmatprep.subr.mxu0 %v32_v28  ;;  %181 = vmatprep.subr.mxu1 %v32_v28 }
  0x1f   :  { %158 = vmatpush3.msra.mxu0 %v16_v29  ;;  %197 = vmatpush3.msra.mxu1 %v16_v29 }
  0x20   :  { %159 = vmatprep.subr.mxu0 %v31_v30  ;;  %182 = vmatprep.subr.mxu1 %v31_v30 }
  0x21   :  { %160 = vmatpush3.msra.mxu0 %v15_v31  ;;  %198 = vmatpush3.msra.mxu1 %v15_v31 }
  0x22   :  { %111 = vmatprep.mubr.f32.mxu0 %v12_v32  ;;  %116 = vmatprep.mubr.f32.mxu1 %v14_v33 }
  0x23   :  { %112 = vmatmul.mubr.f32.vlgmr.msra.gmra.mxu0 %v11_v34  ;;  %117 = vmatmul.mubr.f32.vlgmr.msra.gmra.mxu1 %v13_v35 }
  0xe3   :  { %v161_v36 = vpop.f32.mrf.mxu0  ;;  %v164_v37 = vpop.f32.mrf.mxu1 }
  0xe5   :  { %v162_v38 = vpop.f32.mrf.mxu0  ;;  %v165_v39 = vpop.f32.mrf.mxu1 }
  0xe6   :  { %v163_v40 = vadd.f32 %v162_v38, %v161_v36  ;;  %v166_v41 = vadd.f32 %v165_v39, %v164_v37 }
  0xe8   :  { %123 = vst.msk [vmem:[%s330_s2] sm:$0xff] %vm122_vm0, %v163_v40  ;;  %124 = vst.msk [vmem:[%s330_s2 + $0x8] sm:$0xff] %vm122_vm0, %v166_v41 }

</bundles_post_ra>
